<compile_context>
chip_gen: v7x
topology: tpu7x:2x2x1
jax: 0.10.0
libtpu: 0.0.40
codegen_flags: <defaults>
</compile_context>

<pallas_src>
import functools

import jax
import jax.numpy as jnp
from jax import lax
from jax.experimental import pallas as pl
from jax.experimental.pallas import tpu as pltpu


def _cdiv(a, b):
    return (a + b - 1) // b


def _round_up(a, m):
    return _cdiv(a, m) * m


# VMEM budget: safe on v7x (64 MiB physical); v5e/v6e (128 MiB) could raise it
# together with tm_target for a few extra percent.
_VMEM_LIMIT_BYTES = 48 * 1024 * 1024

# Flipped off (once) if pipeline_mode=pl.Buffered(1) is rejected by the
# installed Pallas lowering; the constant-index weight tile is then simply
# double-buffered (still fetched only once).
_BUFFERED_WEIGHTS_OK = True


def _try_weight_residency(run):
    """run(use_buffered: bool) -> result, with a one-time capability fallback."""
    global _BUFFERED_WEIGHTS_OK
    if _BUFFERED_WEIGHTS_OK:
        try:
            return run(True)
        except Exception:
            _BUFFERED_WEIGHTS_OK = False
    return run(False)


def _choose_tm(M, target):
    """Row-tile size: multiple of 16 (bf16 sublane packing), ~`target`, and an
    even grid when possible so both v7x TensorCores stay busy."""
    tm = min(target, _round_up(max(M, 1), 16))
    n = _cdiv(M, tm)
    if n == 1 and M >= 32:
        tm = _round_up(_cdiv(M, 2), 16)
    elif n > 1 and n % 2:
        tm = _round_up(_cdiv(M, n + 1), 16)
    return tm


def _mish_from_acc(acc, approx):
    # mish(x) = x * tanh(softplus(x)) = x * t/(t+2),  t = e^x (e^x + 2).
    # Clamp matches PyTorch softplus threshold=20 (x > 20 -> identity).
    e = jnp.exp(jnp.minimum(acc, 20.0))
    t = e * (e + 2.0)
    if approx:
        return acc * t * pl.reciprocal(t + 2.0, approx=True)
    return acc * (t / (t + 2.0))


# ----------------------------------------------------------------------------
# Pallas kernel 1: fused  im2col(x) @ W + bias (+ Mish), weights resident
# ----------------------------------------------------------------------------
def _matmul_bias_mish_kernel(x_ref, w_ref, b_ref, y_ref, *, apply_mish, approx):
    """x_ref: (TM, KC), w_ref: (KC, C_out) resident, b_ref: (1, C_out) f32."""
    acc = jnp.dot(x_ref[...], w_ref[...], preferred_element_type=jnp.float32)
    acc = acc + b_ref[...]
    if apply_mish:
        acc = _mish_from_acc(acc, approx)
    y_ref[...] = acc.astype(y_ref.dtype)


def _fused_matmul_bias_mish(x2d, w2d, bias_f32, *, apply_mish, approx,
                            out_dtype, tm_target,
                            vmem_limit=_VMEM_LIMIT_BYTES):
    """x2d: (M, KC), w2d: (KC, C_out), bias: (C_out,) f32 -> (M, C_out)."""
    M, KC = x2d.shape
    KC_w, C_out = w2d.shape
    assert KC == KC_w

    TM = _choose_tm(M, tm_target)
    n_m = _cdiv(M, TM)          # partial final block handled by masked stores

    xsz = x2d.dtype.itemsize
    wsz = w2d.dtype.itemsize
    ysz = jnp.dtype(out_dtype).itemsize
    cost = pl.CostEstimate(
        flops=2 * M * KC * C_out,
        transcendentals=(M * C_out) if apply_mish else 0,
        bytes_accessed=M * KC * xsz + KC * C_out * wsz + M * C_out * ysz
        + C_out * 4)

    kernel = functools.partial(_matmul_bias_mish_kernel,
                               apply_mish=apply_mish, approx=approx)
    bias2d = bias_f32.reshape(1, C_out)

    def run(use_buffered):
        if use_buffered:
            w_spec = pl.BlockSpec((KC, C_out), lambda m: (0, 0),
                                  pipeline_mode=pl.Buffered(1))
        else:
            w_spec = pl.BlockSpec((KC, C_out), lambda m: (0, 0))
        return pl.pallas_call(
            kernel,
            out_shape=jax.ShapeDtypeStruct((M, C_out), out_dtype),
            grid=(n_m,),
            in_specs=[
                pl.BlockSpec((TM, KC), lambda m: (m, 0)),     # activations
                w_spec,                                       # resident weight
                pl.BlockSpec((1, C_out), lambda m: (0, 0)),   # bias
            ],
            out_specs=pl.BlockSpec((TM, C_out), lambda m: (m, 0)),
            compiler_params=pltpu.CompilerParams(
                dimension_semantics=("parallel",),
                vmem_limit_bytes=vmem_limit),
            cost_estimate=cost,
        )(x2d, w2d, bias2d)

    return _try_weight_residency(run)


# ----------------------------------------------------------------------------
# Pallas kernel 2: stride-1 conv as in-kernel tap accumulation (no im2col)
# ----------------------------------------------------------------------------
def _conv_s1_tap_kernel(x_ref, w_ref, b_ref, y_ref, *, K, TM, apply_mish,
                        approx):
    """x_ref: (TM + K - 1, C_in) overlapped row window, w_ref: (K, C_in, C_out)
    resident, b_ref: (1, C_out).  acc[j] = sum_k x[j + k] @ W[k]."""
    acc = jnp.dot(x_ref[0:TM, :], w_ref[0],
                  preferred_element_type=jnp.float32)
    for k in range(1, K):
        acc = acc + jnp.dot(x_ref[k:k + TM, :], w_ref[k],
                            preferred_element_type=jnp.float32)
    acc = acc + b_ref[...]
    if apply_mish:
        acc = _mish_from_acc(acc, approx)
    y_ref[...] = acc.astype(y_ref.dtype)


def _conv_s1_tap_pallas(xl, w, bias, *, padding, apply_mish, approx,
                        compute_dtype, tm_target,
                        vmem_limit=_VMEM_LIMIT_BYTES):
    """Stride-1 (K,1)-conv.  xl: (N, H_in, C_in); w: (K, C_in, C_out)."""
    N, H_in, C_in = xl.shape
    K, _, C_out = w.shape
    H_p = H_in + 2 * padding
    H_out = H_p - K + 1
    assert H_out >= 1

    # Flatten sequence-major; per-sequence "garbage" rows (h >= H_out) are
    # computed and sliced off (they never mix into valid rows).
    xp = jnp.pad(xl.astype(compute_dtype),
                 ((0, 0), (padding, padding), (0, 0)))
    X2 = xp.reshape(N * H_p, C_in)
    M = N * H_p

    TM = _choose_tm(M, tm_target)
    n_m = _cdiv(M, TM)
    TH = TM + K - 1

    # Overlapped row tiles: slab m = X2[m*TM : m*TM + TM + K - 1] (tail slabs
    # zero-padded).  ~(K-1)/TM duplication instead of im2col's K-fold copy.
    slabs = []
    for m in range(n_m):
        lo = m * TM
        hi = min(M, lo + TH)
        s = X2[lo:hi]
        if hi - lo < TH:
            s = jnp.pad(s, ((0, TH - (hi - lo)), (0, 0)))
        slabs.append(s)
    A = jnp.stack(slabs)                       # (n_m, TM + K - 1, C_in)

    wd = w.astype(compute_dtype)               # (K, C_in, C_out), resident
    b32 = bias.astype(jnp.float32).reshape(1, C_out)

    dsz = jnp.dtype(compute_dtype).itemsize
    cost = pl.CostEstimate(
        flops=2 * n_m * TM * K * C_in * C_out,
        transcendentals=(n_m * TM * C_out) if apply_mish else 0,
        bytes_accessed=n_m * TH * C_in * dsz + K * C_in * C_out * dsz
        + M * C_out * dsz + C_out * 4)

    kernel = functools.partial(_conv_s1_tap_kernel, K=K, TM=TM,
                               apply_mish=apply_mish, approx=approx)

    def run(use_buffered):
        if use_buffered:
            w_spec = pl.BlockSpec((K, C_in, C_out), lambda m: (0, 0, 0),
                                  pipeline_mode=pl.Buffered(1))
        else:
            w_spec = pl.BlockSpec((K, C_in, C_out), lambda m: (0, 0, 0))
        return pl.pallas_call(
            kernel,
            out_shape=jax.ShapeDtypeStruct((M, C_out), compute_dtype),
            grid=(n_m,),
            in_specs=[
                pl.BlockSpec((None, TH, C_in), lambda m: (m, 0, 0)),
                w_spec,
                pl.BlockSpec((1, C_out), lambda m: (0, 0)),
            ],
            out_specs=pl.BlockSpec((TM, C_out), lambda m: (m, 0)),
            compiler_params=pltpu.CompilerParams(
                dimension_semantics=("parallel",),
                vmem_limit_bytes=vmem_limit),
            cost_estimate=cost,
        )(A, wd, b32)

    y = _try_weight_residency(run)             # (M, C_out)
    return y.reshape(N, H_p, C_out)[:, :H_out, :]


# ----------------------------------------------------------------------------
# Per-layer glue (im2col, dispatch) in the (N, H, C) layout
# ----------------------------------------------------------------------------
def _im2col_nhc(xl, K, stride, padding):
    """xl: (N, H_in, C) -> X: (N*H_out, K*C) with X[n*H_out+h, k*C+c] =
    xp[n, h*stride + k, c]."""
    N, H_in, C = xl.shape
    H_out = (H_in + 2 * padding - K) // stride + 1
    assert H_out >= 1
    xp = jnp.pad(xl, ((0, 0), (padding, padding), (0, 0)))
    span = (H_out - 1) * stride + 1
    taps = [xp[:, k:k + span:stride, :] for k in range(K)]   # K x (N,H_out,C)
    X = jnp.concatenate(taps, axis=-1)                       # (N, H_out, K*C)
    return X.reshape(N * H_out, K * C), H_out


def _conv_im2col_pallas(xl, w, bias, *, stride, padding, apply_mish, approx,
                        compute_dtype, tm_target):
    N, _, C_in = xl.shape
    K, _, C_out = w.shape
    X, H_out = _im2col_nhc(xl.astype(compute_dtype), K, stride, padding)
    y = _fused_matmul_bias_mish(
        X, w.reshape(K * C_in, C_out).astype(compute_dtype),
        bias.astype(jnp.float32),
        apply_mish=apply_mish, approx=approx, out_dtype=compute_dtype,
        tm_target=tm_target)
    return y.reshape(N, H_out, C_out)


def _conv_xla(xl, w, bias, *, stride, padding, apply_mish, compute_dtype):
    """Degenerate MXU layers (C_in==1 or C_out==1): plain XLA."""
    N, _, C_in = xl.shape
    K, _, C_out = w.shape
    X, H_out = _im2col_nhc(xl.astype(compute_dtype), K, stride, padding)
    acc = jnp.dot(X, w.reshape(K * C_in, C_out).astype(compute_dtype),
                  preferred_element_type=jnp.float32,
                  precision=lax.Precision.HIGHEST)
    acc = acc + bias.astype(jnp.float32)
    if apply_mish:
        acc = _mish_from_acc(acc, approx=False)
    return acc.astype(compute_dtype).reshape(N, H_out, C_out)


def conv_k1(xl, w, bias, *, stride, padding, apply_mish, compute_dtype,
            tm_target):
    _, _, C_in = xl.shape
    K, _, C_out = w.shape
    heavy = (C_in > 1) and (C_out > 1)
    approx = jnp.dtype(compute_dtype) == jnp.dtype(jnp.bfloat16)
    if heavy and stride == 1:
        return _conv_s1_tap_pallas(xl, w, bias, padding=padding,
                                   apply_mish=apply_mish, approx=approx,
                                   compute_dtype=compute_dtype,
                                   tm_target=tm_target)
    if heavy:
        return _conv_im2col_pallas(xl, w, bias, stride=stride, padding=padding,
                                   apply_mish=apply_mish, approx=approx,
                                   compute_dtype=compute_dtype,
                                   tm_target=tm_target)
    return _conv_xla(xl, w, bias, stride=stride, padding=padding,
                     apply_mish=apply_mish, compute_dtype=compute_dtype)


# ----------------------------------------------------------------------------
# DiscriminatorP forward
# ----------------------------------------------------------------------------
def discriminator_p_forward(x, params, period, kernel_size=5, stride=3,
                            compute_dtype=jnp.bfloat16, tm_target=None):
    """x: (b, c=1, t).  Returns (flattened output, fmap list in NCHW)."""
    b, c, t = x.shape
    assert c == 1, "DiscriminatorP expects a single input channel"
    if t % period != 0:
        n_pad = period - t % period
        x = jnp.pad(x, ((0, 0), (0, 0), (0, n_pad)), mode="reflect")
        t = t + n_pad
    H = t // period

    if tm_target is None:
        # dtype-scaled: the f32 (exact-check) path halves its row tile so the
        # resident weights + tiles stay inside the 48 MiB budget on v7x.
        tm_target = 1024 if jnp.dtype(compute_dtype).itemsize <= 2 else 512

    # (b, 1, t) -> (N = b*period, H, C=1); column n = bi*period + p.
    xl = jnp.transpose(x.reshape(b, H, period), (0, 2, 1))
    xl = xl.reshape(b * period, H, 1).astype(compute_dtype)

    def to_nchw(z):
        _, Hh, C = z.shape
        return jnp.transpose(z.reshape(b, period, Hh, C), (0, 3, 2, 1))

    fmap = []
    pad = (kernel_size - 1) // 2
    strides = (stride, stride, stride, stride, 1)
    for (w, bias), s in zip(params["convs"], strides):
        xl = conv_k1(xl, w, bias, stride=s, padding=pad, apply_mish=True,
                     compute_dtype=compute_dtype, tm_target=tm_target)
        fmap.append(to_nchw(xl))        # kept NCHW to preserve the contract

    w, bias = params["conv_post"]       # 1024 -> 1 projection (C_out == 1)
    xl = conv_k1(xl, w, bias, stride=1, padding=1, apply_mish=False,
                 compute_dtype=compute_dtype, tm_target=tm_target)
    y_nchw = to_nchw(xl)
    fmap.append(y_nchw)

    out = y_nchw.reshape(b, -1)         # torch.flatten(x, 1, -1)
    return out, fmap


# ----------------------------------------------------------------------------
# Deterministic synthetic parameters (shapes from the PyTorch __init__)
# ----------------------------------------------------------------------------
def init_params(key, kernel_size=5):
    sequence = (1, 32, 128, 512, 1024)
    specs = [(sequence[i], sequence[i + 1], kernel_size)
             for i in range(len(sequence) - 1)]
    specs.append((1024, 1024, kernel_size))        # 5th conv in self.convs
    post_spec = (1024, 1, 3)                       # conv_post

    params = {"convs": [], "conv_post": None}
    for cin, cout, k in specs:
        key, wk, bk = jax.random.split(key, 3)
        w = jax.random.normal(wk, (k, cin, cout), jnp.float32) / jnp.sqrt(k * cin)
        bias = 0.01 * jax.random.normal(bk, (cout,), jnp.float32)
        params["convs"].append((w, bias))
    cin, cout, k = post_spec
    key, wk, bk = jax.random.split(key, 3)
    w = jax.random.normal(wk, (k, cin, cout), jnp.float32) / jnp.sqrt(k * cin)
    bias = 0.01 * jax.random.normal(bk, (cout,), jnp.float32)
    params["conv_post"] = (w, bias)
    return params


# ----------------------------------------------------------------------------
# Pure-JAX reference (mirrors the PyTorch forward) for the correctness check
# ----------------------------------------------------------------------------
def _mish_ref(x):
    return x * jnp.tanh(jax.nn.softplus(x))


def reference_forward(x, params, period, kernel_size=5, stride=3):
    b, c, t = x.shape
    if t % period != 0:
        n_pad = period - t % period
        x = jnp.pad(x, ((0, 0), (0, 0), (0, n_pad)), mode="reflect")
        t = t + n_pad
    x = x.reshape(b, c, t // period, period)
    pad = (kernel_size - 1) // 2
    strides = (stride, stride, stride, stride, 1)
    for (w, bias), s in zip(params["convs"], strides):
        w_oihw = jnp.transpose(w, (2, 1, 0))[..., None]     # (O, I, K, 1)
        x = lax.conv_general_dilated(
            x, w_oihw, (s, 1), ((pad, pad), (0, 0)),
            dimension_numbers=("NCHW", "OIHW", "NCHW"),
            precision=lax.Precision.HIGHEST)
        x = _mish_ref(x + bias.reshape(1, -1, 1, 1))
    w, bias = params["conv_post"]
    w_oihw = jnp.transpose(w, (2, 1, 0))[..., None]
    x = lax.conv_general_dilated(
        x, w_oihw, (1, 1), ((1, 1), (0, 0)),
        dimension_numbers=("NCHW", "OIHW", "NCHW"),
        precision=lax.Precision.HIGHEST)
    x = x + bias.reshape(1, -1, 1, 1)
    return x.reshape(b, -1)


if __name__ == "__main__":
    key = jax.random.PRNGKey(0)
    kx, kp = jax.random.split(key)

    period = 2
    # (batch, in_channels=1, time); time not divisible by period to exercise
    # the reflect-pad branch of the forward.
    x = jax.random.normal(kx, (2, 1, 63), jnp.float32)
    params = init_params(kp)

    # 1) Default bf16 performance path: run, block, sanity-check.
    out_bf16, fmap_bf16 = discriminator_p_forward(x, params, period)
    out_bf16 = jax.block_until_ready(out_bf16)
    fmap_bf16 = jax.block_until_ready(fmap_bf16)
    assert len(fmap_bf16) == 6                       # 5 convs + conv_post
    assert bool(jnp.all(jnp.isfinite(out_bf16.astype(jnp.float32))))

    # 2) f32 path vs pure-XLA reference (exact-division Mish; only differences
    #    are matmul reduction orders).
    out_f32, fmap_f32 = discriminator_p_forward(x, params, period,
                                                compute_dtype=jnp.float32)
    out_f32 = jax.block_until_ready(out_f32)
    ref = reference_forward(x, params, period)
    assert out_f32.shape == ref.shape, (out_f32.shape, ref.shape)
    assert out_bf16.shape == ref.shape
    assert len(fmap_f32) == 6
    assert jnp.allclose(out_f32, ref, rtol=1e-2, atol=1e-2), (out_f32, ref)

    print("KERNEL_OK")
</pallas_src>

<mosaic_0001>
module attributes {stable_mosaic.version = 11 : i64} {
  func.func @_matmul_bias_mish_kernel(%arg0: i32, %arg1: memref<16x160xbf16, #tpu.memory_space<vmem>>, %arg2: memref<160x128xbf16, #tpu.memory_space<vmem>>, %arg3: memref<1x128xf32, #tpu.memory_space<vmem>>, %arg4: memref<16x128xbf16, #tpu.memory_space<vmem>>) attributes {dimension_semantics = [#tpu.dimension_semantics<parallel>], iteration_bounds = array<i64: 1>, scalar_prefetch = 0 : i64, scratch_operands = 0 : i64, tpu.core_type = #tpu.core_type<tc>, window_params = [{transform_indices = @transform_0, window_bounds = array<i64: 16, 160>}, {pipeline_mode = #tpu.pipeline_mode<synchronous>, transform_indices = @transform_1, window_bounds = array<i64: 160, 128>}, {pipeline_mode = #tpu.pipeline_mode<synchronous>, transform_indices = @transform_2, window_bounds = array<i64: 1, 128>}, {transform_indices = @transform_3, window_bounds = array<i64: 16, 128>}]} {
    %c0 = arith.constant 0 : index
    %c0_0 = arith.constant 0 : index
    %0 = vector.load %arg1[%c0, %c0_0] : memref<16x160xbf16, #tpu.memory_space<vmem>>, vector<16x160xbf16>
    %c0_1 = arith.constant 0 : index
    %c0_2 = arith.constant 0 : index
    %1 = vector.load %arg2[%c0_1, %c0_2] : memref<160x128xbf16, #tpu.memory_space<vmem>>, vector<160x128xbf16>
    %cst = arith.constant dense<0.000000e+00> : vector<16x128xf32>
    %2 = tpu.matmul %0, %1, %cst {dimension_numbers = #tpu.dot_dimension_numbers<[1], [0], [0], [1], [0, 0, 1, 1], [], []>} : vector<16x160xbf16>, vector<160x128xbf16>, vector<16x128xf32> -> vector<16x128xf32>
    %c0_3 = arith.constant 0 : index
    %c0_4 = arith.constant 0 : index
    %3 = vector.load %arg3[%c0_3, %c0_4] : memref<1x128xf32, #tpu.memory_space<vmem>>, vector<1x128xf32>
    %4 = vector.broadcast %3 : vector<1x128xf32> to vector<16x128xf32>
    %5 = arith.addf %2, %4 : vector<16x128xf32>
    %cst_5 = arith.constant 2.000000e+01 : f32
    %6 = vector.broadcast %cst_5 : f32 to vector<16x128xf32>
    %7 = arith.minimumf %5, %6 : vector<16x128xf32>
    %8 = math.exp %7 : vector<16x128xf32>
    %cst_6 = arith.constant 2.000000e+00 : f32
    %9 = vector.broadcast %cst_6 : f32 to vector<16x128xf32>
    %10 = arith.addf %8, %9 : vector<16x128xf32>
    %11 = arith.mulf %8, %10 : vector<16x128xf32>
    %12 = arith.mulf %5, %11 : vector<16x128xf32>
    %cst_7 = arith.constant 2.000000e+00 : f32
    %13 = vector.broadcast %cst_7 : f32 to vector<16x128xf32>
    %14 = arith.addf %11, %13 : vector<16x128xf32>
    %15 = tpu.reciprocal %14 {approx = true} : vector<16x128xf32> -> vector<16x128xf32>
    %16 = arith.mulf %12, %15 : vector<16x128xf32>
    %17 = arith.truncf %16 : vector<16x128xf32> to vector<16x128xbf16>
    %c0_8 = arith.constant 0 : index
    %c0_9 = arith.constant 0 : index
    %18 = vector.load %arg4[%c0_8, %c0_9] : memref<16x128xbf16, #tpu.memory_space<vmem>>, vector<16x128xbf16>
    tpu.vector_store %arg4[%c0_8, %c0_9], %17 {strides = array<i32>} : memref<16x128xbf16, #tpu.memory_space<vmem>>, vector<16x128xbf16>,
    return
  }
  func.func @transform_0(%arg0: i32) -> (i32, i32) {
    %c0_i32 = arith.constant 0 : i32
    %c0_i32_0 = arith.constant 0 : i32
    return %arg0, %c0_i32 : i32, i32
  }
  func.func @transform_1(%arg0: i32) -> (i32, i32) {
    %c0_i32 = arith.constant 0 : i32
    %c0_i32_0 = arith.constant 0 : i32
    %c0_i32_1 = arith.constant 0 : i32
    return %c0_i32, %c0_i32_0 : i32, i32
  }
  func.func @transform_2(%arg0: i32) -> (i32, i32) {
    %c0_i32 = arith.constant 0 : i32
    %c0_i32_0 = arith.constant 0 : i32
    %c0_i32_1 = arith.constant 0 : i32
    return %c0_i32, %c0_i32_0 : i32, i32
  }
  func.func @transform_3(%arg0: i32) -> (i32, i32) {
    %c0_i32 = arith.constant 0 : i32
    %c0_i32_0 = arith.constant 0 : i32
    return %arg0, %c0_i32 : i32, i32
  }
}

module attributes {stable_mosaic.version = 11 : i64} {
  func.func @_matmul_bias_mish_kernel(%arg0: i32, %arg1: memref<16x160xbf16, #tpu.memory_space<vmem>>, %arg2: memref<160x128xbf16, #tpu.memory_space<vmem>>, %arg3: memref<1x128xf32, #tpu.memory_space<vmem>>, %arg4: memref<16x128xbf16, #tpu.memory_space<vmem>>) attributes {dimension_semantics = [#tpu.dimension_semantics<parallel>], iteration_bounds = array<i64: 1>, scalar_prefetch = 0 : i64, scratch_operands = 0 : i64, tpu.core_type = #tpu.core_type<tc>, window_params = [{transform_indices = @transform_0, window_bounds = array<i64: 16, 160>}, {pipeline_mode = #tpu.pipeline_mode<synchronous>, transform_indices = @transform_1, window_bounds = array<i64: 160, 128>}, {pipeline_mode = #tpu.pipeline_mode<synchronous>, transform_indices = @transform_2, window_bounds = array<i64: 1, 128>}, {transform_indices = @transform_3, window_bounds = array<i64: 16, 128>}]} {
    %c0 = arith.constant 0 : index
    %c0_0 = arith.constant 0 : index
    %0 = vector.load %arg1[%c0, %c0_0] : memref<16x160xbf16, #tpu.memory_space<vmem>>, vector<16x160xbf16>
    %c0_1 = arith.constant 0 : index
    %c0_2 = arith.constant 0 : index
    %1 = vector.load %arg2[%c0_1, %c0_2] : memref<160x128xbf16, #tpu.memory_space<vmem>>, vector<160x128xbf16>
    %cst = arith.constant dense<0.000000e+00> : vector<16x128xf32>
    %2 = tpu.matmul %0, %1, %cst {dimension_numbers = #tpu.dot_dimension_numbers<[1], [0], [0], [1], [0, 0, 1, 1], [], []>} : vector<16x160xbf16>, vector<160x128xbf16>, vector<16x128xf32> -> vector<16x128xf32>
    %c0_3 = arith.constant 0 : index
    %c0_4 = arith.constant 0 : index
    %3 = vector.load %arg3[%c0_3, %c0_4] : memref<1x128xf32, #tpu.memory_space<vmem>>, vector<1x128xf32>
    %4 = vector.broadcast %3 : vector<1x128xf32> to vector<16x128xf32>
    %5 = arith.addf %2, %4 : vector<16x128xf32>
    %cst_5 = arith.constant 2.000000e+01 : f32
    %6 = vector.broadcast %cst_5 : f32 to vector<16x128xf32>
    %7 = arith.minimumf %5, %6 : vector<16x128xf32>
    %8 = math.exp %7 : vector<16x128xf32>
    %cst_6 = arith.constant 2.000000e+00 : f32
    %9 = vector.broadcast %cst_6 : f32 to vector<16x128xf32>
    %10 = arith.addf %8, %9 : vector<16x128xf32>
    %11 = arith.mulf %8, %10 : vector<16x128xf32>
    %12 = arith.mulf %5, %11 : vector<16x128xf32>
    %cst_7 = arith.constant 2.000000e+00 : f32
    %13 = vector.broadcast %cst_7 : f32 to vector<16x128xf32>
    %14 = arith.addf %11, %13 : vector<16x128xf32>
    %15 = tpu.reciprocal %14 {approx = true} : vector<16x128xf32> -> vector<16x128xf32>
    %16 = arith.mulf %12, %15 : vector<16x128xf32>
    %17 = arith.truncf %16 : vector<16x128xf32> to vector<16x128xbf16>
    %c0_8 = arith.constant 0 : index
    %c0_9 = arith.constant 0 : index
    %18 = vector.load %arg4[%c0_8, %c0_9] : memref<16x128xbf16, #tpu.memory_space<vmem>>, vector<16x128xbf16>
    tpu.vector_store %arg4[%c0_8, %c0_9], %17 {strides = array<i32>} : memref<16x128xbf16, #tpu.memory_space<vmem>>, vector<16x128xbf16>,
    return
  }
  func.func @transform_0(%arg0: i32) -> (i32, i32) {
    %c0_i32 = arith.constant 0 : i32
    %c0_i32_0 = arith.constant 0 : i32
    return %arg0, %c0_i32 : i32, i32
  }
  func.func @transform_1(%arg0: i32) -> (i32, i32) {
    %c0_i32 = arith.constant 0 : i32
    %c0_i32_0 = arith.constant 0 : i32
    %c0_i32_1 = arith.constant 0 : i32
    return %c0_i32, %c0_i32_0 : i32, i32
  }
  func.func @transform_2(%arg0: i32) -> (i32, i32) {
    %c0_i32 = arith.constant 0 : i32
    %c0_i32_0 = arith.constant 0 : i32
    %c0_i32_1 = arith.constant 0 : i32
    return %c0_i32, %c0_i32_0 : i32, i32
  }
  func.func @transform_3(%arg0: i32) -> (i32, i32) {
    %c0_i32 = arith.constant 0 : i32
    %c0_i32_0 = arith.constant 0 : i32
    return %arg0, %c0_i32 : i32, i32
  }
}

</mosaic_0001>

<bundles_post_ra>
// kernel: tpu_custom_call.1
= control target key start
LH: loop header
LB: loop body
LE: loop exit
PB: predicated region body
PF: predicated region fallthrough
CT: control target
= control target key end

     0   :  { %8 = vsyncpa [#allocation3], 0  ;;  %s430_s0 = inlined_call_operand.hbm [shape: bf16[16,160], index: 0, kind: input, shape index: {}]   ;;  %s431_s1 = inlined_call_operand.hbm [shape: bf16[160,128], index: 1, kind: input, shape index: {}]   ;;  %s432_s2 = inlined_call_operand.vmem [shape: f32[1,128], index: 2, kind: input, shape index: {}]   ;;  %s433_s3 = inlined_call_operand.hbm [shape: bf16[16,128], index: 3, kind: output, shape index: {}]  }
   0x1   :  { %9 = vsyncpa [#allocation6], 0 }
   0x2   :  { %10 = vsyncpa [#allocation4], 0  ;;  %s357_s12 = smov [#allocation2]   ;;  %s285_s16 = scalar_lea.hbm %s430_s0, 256 }
   0x3   :  { %s16_s13 = sshll.u32 %s357_s12, 4  ;;  %p286_p0 = scmp.ne.s32.totalorder %s430_s0, %s285_s16  ;;  %s17_s13 = int_to_ptr.vmem [resolvable:$true] %s16_s13 }
   0x4   :  { %p289_p1 = scmp.lt.u32.totalorder %s285_s16, %s430_s0 }
   0x6   :  { %p291_p2 = pnand %p289_p1, %p286_p0 }
   0x8   :  { %294 = shalt.err (!%p291_p2)
}
   0x9   :  { %s295_s21 = scalar_lea.vmem %s17_s13, 256  ;;  %p300_p4 = scmp.lt.s32.totalorder %s17_s13, %s17_s13 }
   0xa   :  { %p296_p3 = scmp.ne.s32.totalorder %s17_s13, %s295_s21  ;;  %p301_p5 = scmp.lt.s32.totalorder %s295_s21, %s295_s21 }
   0xc   :  { %p302_p6 = por %p301_p5, %p300_p4 }
   0xe   :  { %p303_p7 = pnand %p302_p6, %p296_p3 }
  0x10   :  { %306 = shalt.err (!%p303_p7)
}
  0x11   :  { %s358_s22 = smov 128   ;;  %s359_s23 = smov 8  }
  0x12   :  { %22 = dma.hbm_to_vmem [thread:$0]  %s430_s0, 256, %s17_s13, [#allocation3], %s358_s22, %s358_s22, %s359_s23  }
  0x13   :  { %s360_s26 = smov [#allocation5]   ;;  %s307_s30 = scalar_lea.hbm %s431_s1, 1280 }
  0x14   :  { %s28_s27 = sshll.u32 %s360_s26, 4  ;;  %p308_p8 = scmp.ne.s32.totalorder %s431_s1, %s307_s30  ;;  %s29_s27 = int_to_ptr.vmem [resolvable:$true] %s28_s27 }
  0x15   :  { %p311_p9 = scmp.lt.u32.totalorder %s307_s30, %s431_s1 }
  0x17   :  { %p313_p10 = pnand %p311_p9, %p308_p8 }
  0x19   :  { %316 = shalt.err (!%p313_p10)
}
  0x1a   :  { %s317_s8 = scalar_lea.vmem %s29_s27, 1280  ;;  %p322_p12 = scmp.lt.s32.totalorder %s29_s27, %s29_s27 }
  0x1b   :  { %p318_p11 = scmp.ne.s32.totalorder %s29_s27, %s317_s8  ;;  %p323_p13 = scmp.lt.s32.totalorder %s317_s8, %s317_s8 }
  0x1d   :  { %p324_p0 = por %p323_p13, %p322_p12 }
  0x1f   :  { %p325_p1 = pnand %p324_p0, %p318_p11 }
  0x21   :  { %328 = shalt.err (!%p325_p1)
}
  0x22   :  { %s361_s0 = smov 64   ;;  %s362_s9 = smov 4  }
  0x23   :  { %34 = dma.hbm_to_vmem [thread:$0]  %s431_s1, 1280, %s29_s27, [#allocation6], %s361_s0, %s361_s0, %s362_s9  }
  0x24   :  { %351 = dma.done.wait [#allocation3], 256  }
  0x25   :  { %352 = vsyncadd [#allocation3], 4294967040 }
  0x26   :  { %353 = dma.done.wait [#allocation6], 1280  }
  0x27   :  { %354 = vsyncadd [#allocation6], 4294966016  ;;  %v363_v0 = vmov 0   ;;  %v264_v1 = vld [vmem:[#allocation5] sm:$0xff]   ;;  %v265_v2 = vld [vmem:[#allocation5 + $0x8] sm:$0xff]   ;;  %vm142_vm0 = vcmask 261120  }
  0x28   :  { %146 = vmatprep.subr.bf16.mxu0 %v363_v0  ;;  %v266_v3 = vld [vmem:[#allocation5 + $0x10] sm:$0xff]   ;;  %v267_v4 = vld [vmem:[#allocation5 + $0x18] sm:$0xff]   ;;  %v268_v6 = vld [vmem:[#allocation5 + $0x20] sm:$0xff]  }
  0x29   :  { %147 = vmatpush1.bf16.msra.mxu0 %v264_v1  ;;  %v276_v5 = vld [vmem:[#allocation2 + $0x4] ss:$8 sps:$4 sm:$0xff]   ;;  %v269_v7 = vld [vmem:[#allocation5 + $0x28] sm:$0xff]   ;;  %v272_v10 = vld [vmem:[#allocation5 + $0x40] sm:$0xff]  }
  0x2a   :  { %148 = vmatprep.subr.bf16.mxu0 %v363_v0  ;;  %246 = vmatprep.mubr.msk.bf16.mxu0 %vm142_vm0, %v276_v5  ;;  %v270_v8 = vld [vmem:[#allocation5 + $0x30] sm:$0xff]   ;;  %v271_v9 = vld [vmem:[#allocation5 + $0x38] sm:$0xff]   ;;  %v273_v11 = vld [vmem:[#allocation5 + $0x48] sm:$0xff]  }
  0x2b   :  { %v274_v12 = vld [vmem:[#allocation2] ss:$8 sps:$4 sm:$0xff]  }
  0x2c   :  { %v233_v13 = vld [vmem:[%s432_s2] ss:$0 sm:$0xff]  ;;  %s364_s2 = smov [#allocation7]  }
  0x2d   :  { %149 = vmatpush1.bf16.msra.mxu0 %v265_v2  ;;  %s220_s13 = sshll.u32 %s364_s2, 4  ;;  %s221_s13 = int_to_ptr.vmem [resolvable:$true] %s220_s13 }
  0x2e   :  { %150 = vmatprep.subr.bf16.mxu0 %v363_v0  ;;  %s329_s14 = scalar_lea.vmem %s221_s13, 128  ;;  %p334_p3 = scmp.lt.s32.totalorder %s221_s13, %s221_s13 }
  0x2f   :  { %p330_p2 = scmp.ne.s32.totalorder %s221_s13, %s329_s14  ;;  %p335_p4 = scmp.lt.s32.totalorder %s329_s14, %s329_s14 }
  0x31   :  { %151 = vmatpush1.bf16.msra.mxu0 %v266_v3  ;;  %p336_p5 = por %p335_p4, %p334_p3 }
  0x32   :  { %152 = vmatprep.subr.bf16.mxu0 %v363_v0 }
  0x33   :  { %p337_p6 = pnand %p336_p5, %p330_p2 }
  0x35   :  { %153 = vmatpush1.bf16.msra.mxu0 %v267_v4 }
  0x36   :  { %154 = vmatprep.subr.bf16.mxu0 %v363_v0 }
  0x39   :  { %155 = vmatpush1.bf16.msra.mxu0 %v268_v6 }
  0x3a   :  { %156 = vmatprep.subr.bf16.mxu0 %v363_v0 }
  0x3d   :  { %157 = vmatpush1.bf16.msra.mxu0 %v269_v7 }
  0x3e   :  { %158 = vmatprep.subr.bf16.mxu0 %v363_v0 }
  0x41   :  { %159 = vmatpush1.bf16.msra.mxu0 %v270_v8 }
  0x42   :  { %160 = vmatprep.subr.bf16.mxu0 %v363_v0 }
  0x45   :  { %161 = vmatpush1.bf16.msra.mxu0 %v271_v9 }
  0x46   :  { %162 = vmatprep.subr.bf16.mxu0 %v363_v0 }
  0x49   :  { %163 = vmatpush1.bf16.msra.mxu0 %v272_v10 }
  0x4a   :  { %164 = vmatprep.subr.bf16.mxu0 %v363_v0 }
  0x4d   :  { %165 = vmatpush1.bf16.msra.mxu0 %v273_v11 }
  0x50   :  { %179 = vmatmul.mubr.bf16.vlgmr.msra.gmra.mrb[0].mxu0 %v274_v12 }
 0x123   :  { %v180_v14 = vpop.f32.mrb[0].mxu0 }
 0x124   :  { %v181_v15 = vadd.f32 %v233_v13, %v180_v14  ;;  %v182_v16 = vpop.f32.mrb[1].mxu0 }
 0x125   :  { %v183_v17 = vpop.f32.mrb[2].mxu0 }
 0x126   :  { %v187_v18 = vmin.f32 %v181_v15, 20.0  ;;  %v184_v19 = vadd.f32 %v233_v13, %v183_v17  ;;  %v185_v20 = vpop.f32.mrb[3].mxu0 }
 0x128   :  { %v189_v21 = vmul.f32 1.442695, %v187_v18  ;;  %v188_v22 = vmin.f32 %v184_v19, 20.0 }
 0x12a   :  { %277 = vpow2.f32 %v189_v21  ;;  %v191_v23 = vmul.f32 1.442695, %v188_v22 }
 0x12c   :  { %279 = vpow2.f32 %v191_v23 }
 0x134   :  { %v278_v24 = vpop.eup %277 }
 0x135   :  { %v193_v25 = vadd.f32 2.0, %v278_v24 }
 0x136   :  { %v280_v26 = vpop.eup %279 }
 0x137   :  { %v195_v27 = vmul.f32 %v278_v24, %v193_v25  ;;  %v194_v28 = vadd.f32 2.0, %v280_v26 }
 0x139   :  { %v199_v29 = vadd.f32 2.0, %v195_v27  ;;  %v196_v30 = vmul.f32 %v280_v26, %v194_v28  ;;  %v197_v33 = vmul.f32 %v195_v27, %v181_v15 }
 0x13b   :  { %281 = vrcp.f32 %v199_v29  ;;  %v200_v31 = vadd.f32 2.0, %v196_v30  ;;  %v198_v34 = vmul.f32 %v196_v30, %v184_v19 }
 0x13d   :  { %283 = vrcp.f32 %v200_v31 }
 0x145   :  { %v282_v32 = vpop.eup %281 }
 0x146   :  { %v203_v36 = vmul.f32 %v282_v32, %v197_v33 }
 0x147   :  { %v284_v35 = vpop.eup %283 }
 0x148   :  { %v204_v37 = vmul.f32 %v284_v35, %v198_v34 }
 0x14a   :  { %v254_v38 = vpack.c.bf16 %v204_v37, %v203_v36 }
 0x14c   :  { %255 = vst [vmem:[#allocation7] sm:$0xff] %v254_v38  }
 0x14d   :  { %340 = shalt.err (!%p337_p6)
}
 0x14e   :  { %s341_s17 = scalar_lea.hbm %s433_s3, 128 }
 0x14f   :  { %p342_p7 = scmp.ne.s32.totalorder %s433_s3, %s341_s17  ;;  %p345_p8 = scmp.lt.u32.totalorder %s341_s17, %s433_s3 }
 0x151   :  { %p347_p9 = pnand %p345_p8, %p342_p7 }
 0x153   :  { %350 = shalt.err (!%p347_p9)
}
 0x154   :  { %226 = dma.vmem_to_hbm [thread:$0]  %s221_s13, 128, %s433_s3, [#allocation4], %s361_s0, %s361_s0, %s362_s9  }
 0x155   :  { %355 = dma.done.wait [#allocation4], 128  }
 0x156   :  { %356 = vsyncadd [#allocation4], 4294967168 }
 0x157   :  { %230 = vsyncpa [#allocation3], 1 }
 0x158   :  { %231 = vsyncpa [#allocation6], 1 }
 0x159   :  { %232 = vsyncpa [#allocation4], 1 }

// kernel: tpu_custom_call.1
= control target key start
LH: loop header
LB: loop body
LE: loop exit
PB: predicated region body
PF: predicated region fallthrough
CT: control target
= control target key end

     0   :  { %8 = vsyncpa [#allocation3], 0  ;;  %s430_s0 = inlined_call_operand.hbm [shape: bf16[16,160], index: 0, kind: input, shape index: {}]   ;;  %s431_s1 = inlined_call_operand.hbm [shape: bf16[160,128], index: 1, kind: input, shape index: {}]   ;;  %s432_s2 = inlined_call_operand.vmem [shape: f32[1,128], index: 2, kind: input, shape index: {}]   ;;  %s433_s3 = inlined_call_operand.hbm [shape: bf16[16,128], index: 3, kind: output, shape index: {}]  }
   0x1   :  { %9 = vsyncpa [#allocation6], 0 }
   0x2   :  { %10 = vsyncpa [#allocation4], 0  ;;  %s357_s12 = smov [#allocation2]   ;;  %s285_s16 = scalar_lea.hbm %s430_s0, 256 }
   0x3   :  { %s16_s13 = sshll.u32 %s357_s12, 4  ;;  %p286_p0 = scmp.ne.s32.totalorder %s430_s0, %s285_s16  ;;  %s17_s13 = int_to_ptr.vmem [resolvable:$true] %s16_s13 }
   0x4   :  { %p289_p1 = scmp.lt.u32.totalorder %s285_s16, %s430_s0 }
   0x6   :  { %p291_p2 = pnand %p289_p1, %p286_p0 }
   0x8   :  { %294 = shalt.err (!%p291_p2)
}
   0x9   :  { %s295_s21 = scalar_lea.vmem %s17_s13, 256  ;;  %p300_p4 = scmp.lt.s32.totalorder %s17_s13, %s17_s13 }
   0xa   :  { %p296_p3 = scmp.ne.s32.totalorder %s17_s13, %s295_s21  ;;  %p301_p5 = scmp.lt.s32.totalorder %s295_s21, %s295_s21 }
   0xc   :  { %p302_p6 = por %p301_p5, %p300_p4 }
   0xe   :  { %p303_p7 = pnand %p302_p6, %p296_p3 }
  0x10   :  { %306 = shalt.err (!%p303_p7)
}
  0x11   :  { %s358_s22 = smov 128   ;;  %s359_s23 = smov 8  }
  0x12   :  { %22 = dma.hbm_to_vmem [thread:$0]  %s430_s0, 256, %s17_s13, [#allocation3], %s358_s22, %s358_s22, %s359_s23  }
  0x13   :  { %s360_s26 = smov [#allocation5]   ;;  %s307_s30 = scalar_lea.hbm %s431_s1, 1280 }
  0x14   :  { %s28_s27 = sshll.u32 %s360_s26, 4  ;;  %p308_p8 = scmp.ne.s32.totalorder %s431_s1, %s307_s30  ;;  %s29_s27 = int_to_ptr.vmem [resolvable:$true] %s28_s27 }
  0x15   :  { %p311_p9 = scmp.lt.u32.totalorder %s307_s30, %s431_s1 }
  0x17   :  { %p313_p10 = pnand %p311_p9, %p308_p8 }
  0x19   :  { %316 = shalt.err (!%p313_p10)
}
  0x1a   :  { %s317_s8 = scalar_lea.vmem %s29_s27, 1280  ;;  %p322_p12 = scmp.lt.s32.totalorder %s29_s27, %s29_s27 }
  0x1b   :  { %p318_p11 = scmp.ne.s32.totalorder %s29_s27, %s317_s8  ;;  %p323_p13 = scmp.lt.s32.totalorder %s317_s8, %s317_s8 }
  0x1d   :  { %p324_p0 = por %p323_p13, %p322_p12 }
  0x1f   :  { %p325_p1 = pnand %p324_p0, %p318_p11 }
  0x21   :  { %328 = shalt.err (!%p325_p1)
}
  0x22   :  { %s361_s0 = smov 64   ;;  %s362_s9 = smov 4  }
  0x23   :  { %34 = dma.hbm_to_vmem [thread:$0]  %s431_s1, 1280, %s29_s27, [#allocation6], %s361_s0, %s361_s0, %s362_s9  }
  0x24   :  { %351 = dma.done.wait [#allocation3], 256  }
  0x25   :  { %352 = vsyncadd [#allocation3], 4294967040 }
  0x26   :  { %353 = dma.done.wait [#allocation6], 1280  }
  0x27   :  { %354 = vsyncadd [#allocation6], 4294966016  ;;  %v363_v0 = vmov 0   ;;  %v264_v1 = vld [vmem:[#allocation5] sm:$0xff]   ;;  %v265_v2 = vld [vmem:[#allocation5 + $0x8] sm:$0xff]   ;;  %vm142_vm0 = vcmask 261120  }
  0x28   :  { %146 = vmatprep.subr.bf16.mxu0 %v363_v0  ;;  %v266_v3 = vld [vmem:[#allocation5 + $0x10] sm:$0xff]   ;;  %v267_v4 = vld [vmem:[#allocation5 + $0x18] sm:$0xff]   ;;  %v268_v6 = vld [vmem:[#allocation5 + $0x20] sm:$0xff]  }
  0x29   :  { %147 = vmatpush1.bf16.msra.mxu0 %v264_v1  ;;  %v276_v5 = vld [vmem:[#allocation2 + $0x4] ss:$8 sps:$4 sm:$0xff]   ;;  %v269_v7 = vld [vmem:[#allocation5 + $0x28] sm:$0xff]   ;;  %v272_v10 = vld [vmem:[#allocation5 + $0x40] sm:$0xff]  }
  0x2a   :  { %148 = vmatprep.subr.bf16.mxu0 %v363_v0  ;;  %246 = vmatprep.mubr.msk.bf16.mxu0 %vm142_vm0, %v276_v5  ;;  %v270_v8 = vld [vmem:[#allocation5 + $0x30] sm:$0xff]   ;;  %v271_v9 = vld [vmem:[#allocation5 + $0x38] sm:$0xff]   ;;  %v273_v11 = vld [vmem:[#allocation5 + $0x48] sm:$0xff]  }
  0x2b   :  { %v274_v12 = vld [vmem:[#allocation2] ss:$8 sps:$4 sm:$0xff]  }
  0x2c   :  { %v233_v13 = vld [vmem:[%s432_s2] ss:$0 sm:$0xff]  ;;  %s364_s2 = smov [#allocation7]  }
  0x2d   :  { %149 = vmatpush1.bf16.msra.mxu0 %v265_v2  ;;  %s220_s13 = sshll.u32 %s364_s2, 4  ;;  %s221_s13 = int_to_ptr.vmem [resolvable:$true] %s220_s13 }
  0x2e   :  { %150 = vmatprep.subr.bf16.mxu0 %v363_v0  ;;  %s329_s14 = scalar_lea.vmem %s221_s13, 128  ;;  %p334_p3 = scmp.lt.s32.totalorder %s221_s13, %s221_s13 }
  0x2f   :  { %p330_p2 = scmp.ne.s32.totalorder %s221_s13, %s329_s14  ;;  %p335_p4 = scmp.lt.s32.totalorder %s329_s14, %s329_s14 }
  0x31   :  { %151 = vmatpush1.bf16.msra.mxu0 %v266_v3  ;;  %p336_p5 = por %p335_p4, %p334_p3 }
  0x32   :  { %152 = vmatprep.subr.bf16.mxu0 %v363_v0 }
  0x33   :  { %p337_p6 = pnand %p336_p5, %p330_p2 }
  0x35   :  { %153 = vmatpush1.bf16.msra.mxu0 %v267_v4 }
  0x36   :  { %154 = vmatprep.subr.bf16.mxu0 %v363_v0 }
  0x39   :  { %155 = vmatpush1.bf16.msra.mxu0 %v268_v6 }
  0x3a   :  { %156 = vmatprep.subr.bf16.mxu0 %v363_v0 }
  0x3d   :  { %157 = vmatpush1.bf16.msra.mxu0 %v269_v7 }
  0x3e   :  { %158 = vmatprep.subr.bf16.mxu0 %v363_v0 }
  0x41   :  { %159 = vmatpush1.bf16.msra.mxu0 %v270_v8 }
  0x42   :  { %160 = vmatprep.subr.bf16.mxu0 %v363_v0 }
  0x45   :  { %161 = vmatpush1.bf16.msra.mxu0 %v271_v9 }
  0x46   :  { %162 = vmatprep.subr.bf16.mxu0 %v363_v0 }
  0x49   :  { %163 = vmatpush1.bf16.msra.mxu0 %v272_v10 }
  0x4a   :  { %164 = vmatprep.subr.bf16.mxu0 %v363_v0 }
  0x4d   :  { %165 = vmatpush1.bf16.msra.mxu0 %v273_v11 }
  0x50   :  { %179 = vmatmul.mubr.bf16.vlgmr.msra.gmra.mrb[0].mxu0 %v274_v12 }
 0x123   :  { %v180_v14 = vpop.f32.mrb[0].mxu0 }
 0x124   :  { %v181_v15 = vadd.f32 %v233_v13, %v180_v14  ;;  %v182_v16 = vpop.f32.mrb[1].mxu0 }
 0x125   :  { %v183_v17 = vpop.f32.mrb[2].mxu0 }
 0x126   :  { %v187_v18 = vmin.f32 %v181_v15, 20.0  ;;  %v184_v19 = vadd.f32 %v233_v13, %v183_v17  ;;  %v185_v20 = vpop.f32.mrb[3].mxu0 }
 0x128   :  { %v189_v21 = vmul.f32 1.442695, %v187_v18  ;;  %v188_v22 = vmin.f32 %v184_v19, 20.0 }
 0x12a   :  { %277 = vpow2.f32 %v189_v21  ;;  %v191_v23 = vmul.f32 1.442695, %v188_v22 }
 0x12c   :  { %279 = vpow2.f32 %v191_v23 }
 0x134   :  { %v278_v24 = vpop.eup %277 }
 0x135   :  { %v193_v25 = vadd.f32 2.0, %v278_v24 }
 0x136   :  { %v280_v26 = vpop.eup %279 }
 0x137   :  { %v195_v27 = vmul.f32 %v278_v24, %v193_v25  ;;  %v194_v28 = vadd.f32 2.0, %v280_v26 }
 0x139   :  { %v199_v29 = vadd.f32 2.0, %v195_v27  ;;  %v196_v30 = vmul.f32 %v280_v26, %v194_v28  ;;  %v197_v33 = vmul.f32 %v195_v27, %v181_v15 }
 0x13b   :  { %281 = vrcp.f32 %v199_v29  ;;  %v200_v31 = vadd.f32 2.0, %v196_v30  ;;  %v198_v34 = vmul.f32 %v196_v30, %v184_v19 }
 0x13d   :  { %283 = vrcp.f32 %v200_v31 }
 0x145   :  { %v282_v32 = vpop.eup %281 }
 0x146   :  { %v203_v36 = vmul.f32 %v282_v32, %v197_v33 }
 0x147   :  { %v284_v35 = vpop.eup %283 }
 0x148   :  { %v204_v37 = vmul.f32 %v284_v35, %v198_v34 }
 0x14a   :  { %v254_v38 = vpack.c.bf16 %v204_v37, %v203_v36 }
 0x14c   :  { %255 = vst [vmem:[#allocation7] sm:$0xff] %v254_v38  }
 0x14d   :  { %340 = shalt.err (!%p337_p6)
}
 0x14e   :  { %s341_s17 = scalar_lea.hbm %s433_s3, 128 }
 0x14f   :  { %p342_p7 = scmp.ne.s32.totalorder %s433_s3, %s341_s17  ;;  %p345_p8 = scmp.lt.u32.totalorder %s341_s17, %s433_s3 }
 0x151   :  { %p347_p9 = pnand %p345_p8, %p342_p7 }
 0x153   :  { %350 = shalt.err (!%p347_p9)
}
 0x154   :  { %226 = dma.vmem_to_hbm [thread:$0]  %s221_s13, 128, %s433_s3, [#allocation4], %s361_s0, %s361_s0, %s362_s9  }
 0x155   :  { %355 = dma.done.wait [#allocation4], 128  }
 0x156   :  { %356 = vsyncadd [#allocation4], 4294967168 }
 0x157   :  { %230 = vsyncpa [#allocation3], 1 }
 0x158   :  { %231 = vsyncpa [#allocation6], 1 }
 0x159   :  { %232 = vsyncpa [#allocation4], 1 }

</bundles_post_ra>
